<compile_context>
chip_gen: v6e
topology: v6e:2x2x1
jax: 0.10.0
libtpu: 0.0.40
codegen_flags: <defaults>
</compile_context>

<pallas_src>
import functools
import math

import jax
import jax.numpy as jnp
from jax.experimental import pallas as pl
from jax.experimental.pallas import tpu as pltpu


def _attend(q, k, v):
    """softmax(q @ k^T) @ v, batched over the leading axis.

    The softmax scale is already folded into q (host-side weight fold).
    q, k: (bb, S, c);  v: (bb, S, cv) -> (bb, S, cv)
    """
    s = jnp.einsum("bqc,bkc->bqk", q, k, preferred_element_type=jnp.float32)
    s = s - jnp.max(s, axis=-1, keepdims=True)
    p = jnp.exp(s)
    # EUP reciprocal frees the VALU; numerics trade covered by test tolerance.
    p = p * pl.reciprocal(jnp.sum(p, axis=-1, keepdims=True), approx=True)
    return jnp.einsum("bqk,bkc->bqc", p, v, preferred_element_type=jnp.float32)


# ---------------------------------------------------------------------------
# Kernel: one grid step processes `batch // batch_blocks` batch elements.
#   x_ref : (bb, S, D)
#   w_ref : (4, D, WPAD)  slab 0 [Q1*s1|K1|V1], 1 Wffn1, 2 Wffn2,
#                          slab 3 [V2 (padded to OUT lanes) | Q2*s2 | K2]
#   b_ref : (8, WPAD)     rows 0..3 matching biases, 4 gamma, 5 beta
#   o_ref : (bb, S, OUT)  OUT = dim padded up to a multiple of 128
# ---------------------------------------------------------------------------
def text_encoder_kernel(x_ref, w_ref, b_ref, o_ref, *, num_heads, ln_eps):
    bb, S, D = x_ref.shape
    rows = bb * S
    OUT = o_ref.shape[-1]

    xf = x_ref[...].reshape(rows, D)        # free reshape (leading dims merge)
    bias = b_ref[...]                       # (8, WPAD): one tiny load, sliced below

    # ---- 1) multi-head self-attention (fused QKV, scale folded into Q) ----
    qkv1 = jnp.dot(xf, w_ref[0], preferred_element_type=jnp.float32) + bias[0:1, :]
    q1 = qkv1[:, 0:D].reshape(bb, S, D)
    k1 = qkv1[:, D:2 * D].reshape(bb, S, D)
    v1 = qkv1[:, 2 * D:3 * D].reshape(bb, S, D)

    hd = D // num_heads
    # TODO(synk): at head_dim >= ~32 replace this static per-head loop with a
    # single heads-batched dot_general after one lane->sublane relayout.
    outs = []
    for h in range(num_heads):
        sl = slice(h * hd, (h + 1) * hd)
        outs.append(_attend(q1[..., sl], k1[..., sl], v1[..., sl]))
    inter = outs[0] if num_heads == 1 else jnp.concatenate(outs, axis=-1)
    inter = inter.reshape(rows, D)

    # ---- 2) residual + LayerNorm (statistics over the real D lanes, f32) ----
    new = inter + xf
    mean = jnp.mean(new, axis=-1, keepdims=True)
    var = jnp.mean(jnp.square(new - mean), axis=-1, keepdims=True)
    normed = (new - mean) * jax.lax.rsqrt(var + ln_eps)
    normed = normed * bias[4:5, 0:D] + bias[5:6, 0:D]

    # ---- 3) FFN: Linear -> ReLU -> Linear (cannot fuse: ReLU in between) ----
    # Padded weight lanes are exact zeros -> padded result lanes are zeros;
    # slice back to D before the next matmul.
    # TODO(synk): cast matmul operands to bf16 (f32 accumulate) at real sizes.
    h1 = jnp.maximum(
        jnp.dot(normed, w_ref[1], preferred_element_type=jnp.float32) + bias[1:2, :],
        0.0,
    )[:, 0:D]
    ffn = (
        jnp.dot(h1, w_ref[2], preferred_element_type=jnp.float32) + bias[2:3, :]
    )[:, 0:D]

    # ---- 4) single-head attention; V block pre-padded to OUT lanes so the ----
    # ---- final store is an unmasked, lane-dense vst.                      ----
    qkv2 = jnp.dot(ffn, w_ref[3], preferred_element_type=jnp.float32) + bias[3:4, :]
    v2 = qkv2[:, 0:OUT].reshape(bb, S, OUT)          # lanes D..OUT-1 are zero
    q2 = qkv2[:, OUT:OUT + D].reshape(bb, S, D)
    k2 = qkv2[:, OUT + D:OUT + 2 * D].reshape(bb, S, D)

    o_ref[...] = _attend(q2, k2, v2)                 # (bb, S, OUT)


# ---------------------------------------------------------------------------
# Wrapper: packs/fuses the weights (3 input DMAs total) and launches a single
# (or batch_blocks, for dual-TC scaling) grid step.
#   W: [8, D, D] (pre-transposed for x @ W)
#        slots 0 Wq1  1 Wk1  2 Wv1  3 Wffn1  4 Wffn2  5 Wq2  6 Wk2  7 Wv2
#   B: [10, D]  slots 0..7 matching biases, 8 ln_gamma, 9 ln_beta
# Leave batch_blocks=1 unless per-block work clearly exceeds the ~0.35 us
# grid-step overhead (tens of thousands of rows); only then split across the
# two v7x TensorCores.
# ---------------------------------------------------------------------------
def text_encoder_pallas(x, W, B, *, num_heads, ln_eps=1e-5, batch_blocks=1):
    batch, seq, dim = x.shape
    assert dim % num_heads == 0
    assert batch % batch_blocks == 0
    bb = batch // batch_blocks

    scale1 = 1.0 / math.sqrt(dim // num_heads)   # multi-head attention scale
    scale2 = 1.0 / math.sqrt(dim)                # single-head attention scale

    out_pad = ((dim + 127) // 128) * 128         # lane-dense output width
    wpad = max(3 * dim, out_pad + 2 * dim)       # packed weight lane width

    Wp = jnp.zeros((4, dim, wpad), jnp.float32)
    Bp = jnp.zeros((8, wpad), jnp.float32)

    # slab 0: attention-1 fused QKV [Q*scale1 | K | V]
    Wp = Wp.at[0, :, 0:dim].set(W[0] * scale1)
    Wp = Wp.at[0, :, dim:2 * dim].set(W[1])
    Wp = Wp.at[0, :, 2 * dim:3 * dim].set(W[2])
    Bp = Bp.at[0, 0:dim].set(B[0] * scale1)
    Bp = Bp.at[0, dim:2 * dim].set(B[1])
    Bp = Bp.at[0, 2 * dim:3 * dim].set(B[2])
    # slabs 1/2: FFN linears
    Wp = Wp.at[1, :, 0:dim].set(W[3])
    Bp = Bp.at[1, 0:dim].set(B[3])
    Wp = Wp.at[2, :, 0:dim].set(W[4])
    Bp = Bp.at[2, 0:dim].set(B[4])
    # slab 3: attention-2 fused [V padded to out_pad | Q*scale2 | K]
    Wp = Wp.at[3, :, 0:dim].set(W[7])
    Wp = Wp.at[3, :, out_pad:out_pad + dim].set(W[5] * scale2)
    Wp = Wp.at[3, :, out_pad + dim:out_pad + 2 * dim].set(W[6])
    Bp = Bp.at[3, 0:dim].set(B[7])
    Bp = Bp.at[3, out_pad:out_pad + dim].set(B[5] * scale2)
    Bp = Bp.at[3, out_pad + dim:out_pad + 2 * dim].set(B[6])
    # rows 4/5: LayerNorm gamma / beta
    Bp = Bp.at[4, 0:dim].set(B[8])
    Bp = Bp.at[5, 0:dim].set(B[9])

    # Advisory cost hint for XLA scheduling around the custom call.
    rows = batch * seq
    flops = (
        2 * rows * dim * wpad                       # fused QKV 1
        + 4 * rows * dim * dim                      # FFN (2 matmuls)
        + 2 * rows * dim * wpad                     # fused QKV 2
        + 4 * batch * seq * seq * dim               # attn-1 scores + PV
        + 2 * batch * seq * seq * (dim + out_pad)   # attn-2 scores + PV
    )
    cost = pl.CostEstimate(
        flops=flops,
        transcendentals=batch * seq * seq * (num_heads + 1),
        bytes_accessed=4 * (x.size + Wp.size + Bp.size + rows * out_pad),
    )

    kernel = functools.partial(
        text_encoder_kernel, num_heads=num_heads, ln_eps=ln_eps
    )

    out_padded = pl.pallas_call(
        kernel,
        out_shape=jax.ShapeDtypeStruct((batch, seq, out_pad), jnp.float32),
        grid=(batch_blocks,),
        in_specs=[
            pl.BlockSpec((bb, seq, dim), lambda i: (i, 0, 0)),
            pl.BlockSpec(Wp.shape, lambda i: (0, 0, 0)),
            pl.BlockSpec(Bp.shape, lambda i: (0, 0)),
        ],
        out_specs=pl.BlockSpec((bb, seq, out_pad), lambda i: (i, 0, 0)),
        compiler_params=pltpu.CompilerParams(
            dimension_semantics=("parallel",)   # dual-TC sharding when batch_blocks>1
        ),
        cost_estimate=cost,
    )(x, Wp, Bp)

    return out_padded[..., :dim]


# ---------------------------------------------------------------------------
# Pure-JAX reference (mirrors the PyTorch forward) for correctness checking.
# ---------------------------------------------------------------------------
def text_encoder_ref(x, W, B, *, num_heads, ln_eps=1e-5):
    D = x.shape[-1]

    def linear(inp, wi, bi):
        return inp @ W[wi] + B[bi]

    def attn(inp, wq, bq, wk, bk, wv, bv, heads):
        q, k, v = linear(inp, wq, bq), linear(inp, wk, bk), linear(inp, wv, bv)
        hd = D // heads
        bsz, S, _ = inp.shape
        qh = q.reshape(bsz, S, heads, hd).transpose(0, 2, 1, 3)
        kh = k.reshape(bsz, S, heads, hd).transpose(0, 2, 1, 3)
        vh = v.reshape(bsz, S, heads, hd).transpose(0, 2, 1, 3)
        s = jnp.einsum("bhqd,bhkd->bhqk", qh, kh) / jnp.sqrt(jnp.float32(hd))
        p = jax.nn.softmax(s, axis=-1)
        o = jnp.einsum("bhqk,bhkd->bhqd", p, vh)
        return o.transpose(0, 2, 1, 3).reshape(bsz, S, D)

    inter = attn(x, 0, 0, 1, 1, 2, 2, num_heads)
    new = inter + x
    mean = jnp.mean(new, axis=-1, keepdims=True)
    var = jnp.mean((new - mean) ** 2, axis=-1, keepdims=True)
    normed = (new - mean) / jnp.sqrt(var + ln_eps) * B[8] + B[9]
    h1 = jnp.maximum(normed @ W[3] + B[3], 0.0)
    ffn_out = h1 @ W[4] + B[4]
    return attn(ffn_out, 5, 5, 6, 6, 7, 7, 1)


if __name__ == "__main__":
    NUM_HEADS = 4
    BATCH, SEQ, DIM = 2, 8, 32

    key = jax.random.PRNGKey(0)
    kx, kw, kb = jax.random.split(key, 3)

    x = jax.random.normal(kx, (BATCH, SEQ, DIM), dtype=jnp.float32)

    # 8 weight matrices (already transposed for x @ W), 10 feature vectors.
    W = 0.1 * jax.random.normal(kw, (8, DIM, DIM), dtype=jnp.float32)
    B = 0.05 * jax.random.normal(kb, (10, DIM), dtype=jnp.float32)
    B = B.at[8].set(1.0 + 0.05 * B[8])   # LayerNorm gamma ~ 1
    B = B.at[9].set(0.0)                 # LayerNorm beta = 0

    out = text_encoder_pallas(x, W, B, num_heads=NUM_HEADS)
    out = jax.block_until_ready(out)

    ref = text_encoder_ref(x, W, B, num_heads=NUM_HEADS)
    assert out.shape == (BATCH, SEQ, DIM)
    # Tolerance accounts for pl.reciprocal(approx=True) in the softmax.
    assert jnp.allclose(out, ref, atol=2e-3, rtol=2e-3), (
        float(jnp.max(jnp.abs(out - ref)))
    )
    print("KERNEL_OK")
</pallas_src>

<mosaic_0001>
module attributes {stable_mosaic.version = 11 : i64} {
  func.func @text_encoder_kernel(%arg0: i32, %arg1: memref<2x8x32xf32, #tpu.memory_space<vmem>>, %arg2: memref<4x32x192xf32, #tpu.memory_space<vmem>>, %arg3: memref<8x192xf32, #tpu.memory_space<vmem>>, %arg4: memref<2x8x128xf32, #tpu.memory_space<vmem>>) attributes {dimension_semantics = [#tpu.dimension_semantics<parallel>], iteration_bounds = array<i64: 1>, scalar_prefetch = 0 : i64, scratch_operands = 0 : i64, tpu.core_type = #tpu.core_type<tc>, window_params = [{transform_indices = @transform_0, window_bounds = array<i64: 2, 8, 32>}, {pipeline_mode = #tpu.pipeline_mode<synchronous>, transform_indices = @transform_1, window_bounds = array<i64: 4, 32, 192>}, {pipeline_mode = #tpu.pipeline_mode<synchronous>, transform_indices = @transform_2, window_bounds = array<i64: 8, 192>}, {transform_indices = @transform_3, window_bounds = array<i64: 2, 8, 128>}]} {
    %c0 = arith.constant 0 : index
    %c0_0 = arith.constant 0 : index
    %c0_1 = arith.constant 0 : index
    %0 = vector.load %arg1[%c0, %c0_0, %c0_1] : memref<2x8x32xf32, #tpu.memory_space<vmem>>, vector<2x8x32xf32>
    %1 = vector.shape_cast %0 : vector<2x8x32xf32> to vector<16x32xf32>
    %c0_2 = arith.constant 0 : index
    %c0_3 = arith.constant 0 : index
    %2 = vector.load %arg3[%c0_2, %c0_3] : memref<8x192xf32, #tpu.memory_space<vmem>>, vector<8x192xf32>
    %c0_4 = arith.constant 0 : index
    %c0_5 = arith.constant 0 : index
    %c0_6 = arith.constant 0 : index
    %3 = vector.load %arg2[%c0_4, %c0_5, %c0_6] : memref<4x32x192xf32, #tpu.memory_space<vmem>>, vector<1x32x192xf32>
    %4 = vector.shape_cast %3 : vector<1x32x192xf32> to vector<32x192xf32>
    %cst = arith.constant dense<0.000000e+00> : vector<16x192xf32>
    %5 = tpu.matmul %1, %4, %cst {dimension_numbers = #tpu.dot_dimension_numbers<[1], [0], [0], [1], [0, 0, 1, 1], [], []>} : vector<16x32xf32>, vector<32x192xf32>, vector<16x192xf32> -> vector<16x192xf32>
    %6 = vector.extract_strided_slice %2 {offsets = [0, 0], sizes = [1, 192], strides = [1, 1]} : vector<8x192xf32> to vector<1x192xf32>
    %7 = vector.broadcast %6 : vector<1x192xf32> to vector<16x192xf32>
    %8 = arith.addf %5, %7 : vector<16x192xf32>
    %9 = vector.extract_strided_slice %8 {offsets = [0, 0], sizes = [16, 32], strides = [1, 1]} : vector<16x192xf32> to vector<16x32xf32>
    %10 = vector.shape_cast %9 : vector<16x32xf32> to vector<2x8x32xf32>
    %11 = vector.extract_strided_slice %8 {offsets = [0, 32], sizes = [16, 32], strides = [1, 1]} : vector<16x192xf32> to vector<16x32xf32>
    %12 = vector.shape_cast %11 : vector<16x32xf32> to vector<2x8x32xf32>
    %13 = vector.extract_strided_slice %8 {offsets = [0, 64], sizes = [16, 32], strides = [1, 1]} : vector<16x192xf32> to vector<16x32xf32>
    %14 = vector.shape_cast %13 : vector<16x32xf32> to vector<2x8x32xf32>
    %15 = vector.extract_strided_slice %10 {offsets = [0, 0, 0], sizes = [2, 8, 8], strides = [1, 1, 1]} : vector<2x8x32xf32> to vector<2x8x8xf32>
    %16 = vector.extract_strided_slice %12 {offsets = [0, 0, 0], sizes = [2, 8, 8], strides = [1, 1, 1]} : vector<2x8x32xf32> to vector<2x8x8xf32>
    %17 = vector.extract_strided_slice %14 {offsets = [0, 0, 0], sizes = [2, 8, 8], strides = [1, 1, 1]} : vector<2x8x32xf32> to vector<2x8x8xf32>
    "tpu.trace_start"() <{level = 10 : i32, message = "bqc,bkc->bqk"}> : () -> ()
    %cst_7 = arith.constant dense<0.000000e+00> : vector<2x8x8xf32>
    %18 = tpu.matmul %15, %16, %cst_7 {dimension_numbers = #tpu.dot_dimension_numbers<[2], [2], [1], [1], [0, 0, 0, 1, 1, 1], [0], [0]>} : vector<2x8x8xf32>, vector<2x8x8xf32>, vector<2x8x8xf32> -> vector<2x8x8xf32>
    "tpu.trace_stop"() : () -> ()
    %cst_8 = arith.constant dense<0xFF800000> : vector<2x8xf32>
    %19 = vector.multi_reduction <maximumf>, %18, %cst_8 [2] : vector<2x8x8xf32> to vector<2x8xf32>
    %20 = vector.shape_cast %19 : vector<2x8xf32> to vector<2x8x1xf32>
    %21 = vector.broadcast %20 : vector<2x8x1xf32> to vector<2x8x8xf32>
    %22 = arith.subf %18, %21 : vector<2x8x8xf32>
    %23 = math.exp %22 : vector<2x8x8xf32>
    %cst_9 = arith.constant dense<0.000000e+00> : vector<2x8xf32>
    %24 = vector.multi_reduction <add>, %23, %cst_9 [2] : vector<2x8x8xf32> to vector<2x8xf32>
    %25 = vector.shape_cast %24 : vector<2x8xf32> to vector<2x8x1xf32>
    %26 = tpu.reciprocal %25 {approx = true} : vector<2x8x1xf32> -> vector<2x8x1xf32>
    %27 = vector.broadcast %26 : vector<2x8x1xf32> to vector<2x8x8xf32>
    %28 = arith.mulf %23, %27 : vector<2x8x8xf32>
    "tpu.trace_start"() <{level = 10 : i32, message = "bqk,bkc->bqc"}> : () -> ()
    %cst_10 = arith.constant dense<0.000000e+00> : vector<2x8x8xf32>
    %29 = tpu.matmul %28, %17, %cst_10 {dimension_numbers = #tpu.dot_dimension_numbers<[2], [1], [1], [2], [0, 0, 0, 1, 1, 2], [0], [0]>} : vector<2x8x8xf32>, vector<2x8x8xf32>, vector<2x8x8xf32> -> vector<2x8x8xf32>
    "tpu.trace_stop"() : () -> ()
    %30 = vector.extract_strided_slice %10 {offsets = [0, 0, 8], sizes = [2, 8, 8], strides = [1, 1, 1]} : vector<2x8x32xf32> to vector<2x8x8xf32>
    %31 = vector.extract_strided_slice %12 {offsets = [0, 0, 8], sizes = [2, 8, 8], strides = [1, 1, 1]} : vector<2x8x32xf32> to vector<2x8x8xf32>
    %32 = vector.extract_strided_slice %14 {offsets = [0, 0, 8], sizes = [2, 8, 8], strides = [1, 1, 1]} : vector<2x8x32xf32> to vector<2x8x8xf32>
    "tpu.trace_start"() <{level = 10 : i32, message = "bqc,bkc->bqk"}> : () -> ()
    %cst_11 = arith.constant dense<0.000000e+00> : vector<2x8x8xf32>
    %33 = tpu.matmul %30, %31, %cst_11 {dimension_numbers = #tpu.dot_dimension_numbers<[2], [2], [1], [1], [0, 0, 0, 1, 1, 1], [0], [0]>} : vector<2x8x8xf32>, vector<2x8x8xf32>, vector<2x8x8xf32> -> vector<2x8x8xf32>
    "tpu.trace_stop"() : () -> ()
    %cst_12 = arith.constant dense<0xFF800000> : vector<2x8xf32>
    %34 = vector.multi_reduction <maximumf>, %33, %cst_12 [2] : vector<2x8x8xf32> to vector<2x8xf32>
    %35 = vector.shape_cast %34 : vector<2x8xf32> to vector<2x8x1xf32>
    %36 = vector.broadcast %35 : vector<2x8x1xf32> to vector<2x8x8xf32>
    %37 = arith.subf %33, %36 : vector<2x8x8xf32>
    %38 = math.exp %37 : vector<2x8x8xf32>
    %cst_13 = arith.constant dense<0.000000e+00> : vector<2x8xf32>
    %39 = vector.multi_reduction <add>, %38, %cst_13 [2] : vector<2x8x8xf32> to vector<2x8xf32>
    %40 = vector.shape_cast %39 : vector<2x8xf32> to vector<2x8x1xf32>
    %41 = tpu.reciprocal %40 {approx = true} : vector<2x8x1xf32> -> vector<2x8x1xf32>
    %42 = vector.broadcast %41 : vector<2x8x1xf32> to vector<2x8x8xf32>
    %43 = arith.mulf %38, %42 : vector<2x8x8xf32>
    "tpu.trace_start"() <{level = 10 : i32, message = "bqk,bkc->bqc"}> : () -> ()
    %cst_14 = arith.constant dense<0.000000e+00> : vector<2x8x8xf32>
    %44 = tpu.matmul %43, %32, %cst_14 {dimension_numbers = #tpu.dot_dimension_numbers<[2], [1], [1], [2], [0, 0, 0, 1, 1, 2], [0], [0]>} : vector<2x8x8xf32>, vector<2x8x8xf32>, vector<2x8x8xf32> -> vector<2x8x8xf32>
    "tpu.trace_stop"() : () -> ()
    %45 = vector.extract_strided_slice %10 {offsets = [0, 0, 16], sizes = [2, 8, 8], strides = [1, 1, 1]} : vector<2x8x32xf32> to vector<2x8x8xf32>
    %46 = vector.extract_strided_slice %12 {offsets = [0, 0, 16], sizes = [2, 8, 8], strides = [1, 1, 1]} : vector<2x8x32xf32> to vector<2x8x8xf32>
    %47 = vector.extract_strided_slice %14 {offsets = [0, 0, 16], sizes = [2, 8, 8], strides = [1, 1, 1]} : vector<2x8x32xf32> to vector<2x8x8xf32>
    "tpu.trace_start"() <{level = 10 : i32, message = "bqc,bkc->bqk"}> : () -> ()
    %cst_15 = arith.constant dense<0.000000e+00> : vector<2x8x8xf32>
    %48 = tpu.matmul %45, %46, %cst_15 {dimension_numbers = #tpu.dot_dimension_numbers<[2], [2], [1], [1], [0, 0, 0, 1, 1, 1], [0], [0]>} : vector<2x8x8xf32>, vector<2x8x8xf32>, vector<2x8x8xf32> -> vector<2x8x8xf32>
    "tpu.trace_stop"() : () -> ()
    %cst_16 = arith.constant dense<0xFF800000> : vector<2x8xf32>
    %49 = vector.multi_reduction <maximumf>, %48, %cst_16 [2] : vector<2x8x8xf32> to vector<2x8xf32>
    %50 = vector.shape_cast %49 : vector<2x8xf32> to vector<2x8x1xf32>
    %51 = vector.broadcast %50 : vector<2x8x1xf32> to vector<2x8x8xf32>
    %52 = arith.subf %48, %51 : vector<2x8x8xf32>
    %53 = math.exp %52 : vector<2x8x8xf32>
    %cst_17 = arith.constant dense<0.000000e+00> : vector<2x8xf32>
    %54 = vector.multi_reduction <add>, %53, %cst_17 [2] : vector<2x8x8xf32> to vector<2x8xf32>
    %55 = vector.shape_cast %54 : vector<2x8xf32> to vector<2x8x1xf32>
    %56 = tpu.reciprocal %55 {approx = true} : vector<2x8x1xf32> -> vector<2x8x1xf32>
    %57 = vector.broadcast %56 : vector<2x8x1xf32> to vector<2x8x8xf32>
    %58 = arith.mulf %53, %57 : vector<2x8x8xf32>
    "tpu.trace_start"() <{level = 10 : i32, message = "bqk,bkc->bqc"}> : () -> ()
    %cst_18 = arith.constant dense<0.000000e+00> : vector<2x8x8xf32>
    %59 = tpu.matmul %58, %47, %cst_18 {dimension_numbers = #tpu.dot_dimension_numbers<[2], [1], [1], [2], [0, 0, 0, 1, 1, 2], [0], [0]>} : vector<2x8x8xf32>, vector<2x8x8xf32>, vector<2x8x8xf32> -> vector<2x8x8xf32>
    "tpu.trace_stop"() : () -> ()
    %60 = vector.extract_strided_slice %10 {offsets = [0, 0, 24], sizes = [2, 8, 8], strides = [1, 1, 1]} : vector<2x8x32xf32> to vector<2x8x8xf32>
    %61 = vector.extract_strided_slice %12 {offsets = [0, 0, 24], sizes = [2, 8, 8], strides = [1, 1, 1]} : vector<2x8x32xf32> to vector<2x8x8xf32>
    %62 = vector.extract_strided_slice %14 {offsets = [0, 0, 24], sizes = [2, 8, 8], strides = [1, 1, 1]} : vector<2x8x32xf32> to vector<2x8x8xf32>
    "tpu.trace_start"() <{level = 10 : i32, message = "bqc,bkc->bqk"}> : () -> ()
    %cst_19 = arith.constant dense<0.000000e+00> : vector<2x8x8xf32>
    %63 = tpu.matmul %60, %61, %cst_19 {dimension_numbers = #tpu.dot_dimension_numbers<[2], [2], [1], [1], [0, 0, 0, 1, 1, 1], [0], [0]>} : vector<2x8x8xf32>, vector<2x8x8xf32>, vector<2x8x8xf32> -> vector<2x8x8xf32>
    "tpu.trace_stop"() : () -> ()
    %cst_20 = arith.constant dense<0xFF800000> : vector<2x8xf32>
    %64 = vector.multi_reduction <maximumf>, %63, %cst_20 [2] : vector<2x8x8xf32> to vector<2x8xf32>
    %65 = vector.shape_cast %64 : vector<2x8xf32> to vector<2x8x1xf32>
    %66 = vector.broadcast %65 : vector<2x8x1xf32> to vector<2x8x8xf32>
    %67 = arith.subf %63, %66 : vector<2x8x8xf32>
    %68 = math.exp %67 : vector<2x8x8xf32>
    %cst_21 = arith.constant dense<0.000000e+00> : vector<2x8xf32>
    %69 = vector.multi_reduction <add>, %68, %cst_21 [2] : vector<2x8x8xf32> to vector<2x8xf32>
    %70 = vector.shape_cast %69 : vector<2x8xf32> to vector<2x8x1xf32>
    %71 = tpu.reciprocal %70 {approx = true} : vector<2x8x1xf32> -> vector<2x8x1xf32>
    %72 = vector.broadcast %71 : vector<2x8x1xf32> to vector<2x8x8xf32>
    %73 = arith.mulf %68, %72 : vector<2x8x8xf32>
    "tpu.trace_start"() <{level = 10 : i32, message = "bqk,bkc->bqc"}> : () -> ()
    %cst_22 = arith.constant dense<0.000000e+00> : vector<2x8x8xf32>
    %74 = tpu.matmul %73, %62, %cst_22 {dimension_numbers = #tpu.dot_dimension_numbers<[2], [1], [1], [2], [0, 0, 0, 1, 1, 2], [0], [0]>} : vector<2x8x8xf32>, vector<2x8x8xf32>, vector<2x8x8xf32> -> vector<2x8x8xf32>
    "tpu.trace_stop"() : () -> ()
    %75 = tpu.concatenate %29, %44, %59, %74 in 2 : vector<2x8x8xf32>, vector<2x8x8xf32>, vector<2x8x8xf32>, vector<2x8x8xf32> -> vector<2x8x32xf32>
    %76 = vector.shape_cast %75 : vector<2x8x32xf32> to vector<16x32xf32>
    %77 = arith.addf %76, %1 : vector<16x32xf32>
    %cst_23 = arith.constant dense<0.000000e+00> : vector<16xf32>
    %78 = vector.multi_reduction <add>, %77, %cst_23 [1] : vector<16x32xf32> to vector<16xf32>
    %79 = vector.shape_cast %78 : vector<16xf32> to vector<16x1xf32>
    %cst_24 = arith.constant 3.200000e+01 : f32
    %80 = vector.broadcast %cst_24 : f32 to vector<16x1xf32>
    %81 = arith.divf %79, %80 : vector<16x1xf32>
    %82 = vector.broadcast %81 : vector<16x1xf32> to vector<16x32xf32>
    %83 = arith.subf %77, %82 : vector<16x32xf32>
    %84 = arith.mulf %83, %83 : vector<16x32xf32>
    %cst_25 = arith.constant dense<0.000000e+00> : vector<16xf32>
    %85 = vector.multi_reduction <add>, %84, %cst_25 [1] : vector<16x32xf32> to vector<16xf32>
    %86 = vector.shape_cast %85 : vector<16xf32> to vector<16x1xf32>
    %cst_26 = arith.constant 3.200000e+01 : f32
    %87 = vector.broadcast %cst_26 : f32 to vector<16x1xf32>
    %88 = arith.divf %86, %87 : vector<16x1xf32>
    %89 = vector.broadcast %81 : vector<16x1xf32> to vector<16x32xf32>
    %90 = arith.subf %77, %89 : vector<16x32xf32>
    %cst_27 = arith.constant 9.99999974E-6 : f32
    %91 = vector.broadcast %cst_27 : f32 to vector<16x1xf32>
    %92 = arith.addf %88, %91 : vector<16x1xf32>
    %93 = math.rsqrt %92 : vector<16x1xf32>
    %94 = vector.broadcast %93 : vector<16x1xf32> to vector<16x32xf32>
    %95 = arith.mulf %90, %94 : vector<16x32xf32>
    %96 = vector.extract_strided_slice %2 {offsets = [4, 0], sizes = [1, 32], strides = [1, 1]} : vector<8x192xf32> to vector<1x32xf32>
    %97 = vector.broadcast %96 : vector<1x32xf32> to vector<16x32xf32>
    %98 = arith.mulf %95, %97 : vector<16x32xf32>
    %99 = vector.extract_strided_slice %2 {offsets = [5, 0], sizes = [1, 32], strides = [1, 1]} : vector<8x192xf32> to vector<1x32xf32>
    %100 = vector.broadcast %99 : vector<1x32xf32> to vector<16x32xf32>
    %101 = arith.addf %98, %100 : vector<16x32xf32>
    %c1 = arith.constant 1 : index
    %c0_28 = arith.constant 0 : index
    %c0_29 = arith.constant 0 : index
    %102 = vector.load %arg2[%c1, %c0_28, %c0_29] : memref<4x32x192xf32, #tpu.memory_space<vmem>>, vector<1x32x192xf32>
    %103 = vector.shape_cast %102 : vector<1x32x192xf32> to vector<32x192xf32>
    %cst_30 = arith.constant dense<0.000000e+00> : vector<16x192xf32>
    %104 = tpu.matmul %101, %103, %cst_30 {dimension_numbers = #tpu.dot_dimension_numbers<[1], [0], [0], [1], [0, 0, 1, 1], [], []>} : vector<16x32xf32>, vector<32x192xf32>, vector<16x192xf32> -> vector<16x192xf32>
    %105 = vector.extract_strided_slice %2 {offsets = [1, 0], sizes = [1, 192], strides = [1, 1]} : vector<8x192xf32> to vector<1x192xf32>
    %106 = vector.broadcast %105 : vector<1x192xf32> to vector<16x192xf32>
    %107 = arith.addf %104, %106 : vector<16x192xf32>
    %cst_31 = arith.constant 0.000000e+00 : f32
    %108 = vector.broadcast %cst_31 : f32 to vector<16x192xf32>
    %109 = arith.maximumf %107, %108 : vector<16x192xf32>
    %110 = vector.extract_strided_slice %109 {offsets = [0, 0], sizes = [16, 32], strides = [1, 1]} : vector<16x192xf32> to vector<16x32xf32>
    %c2 = arith.constant 2 : index
    %c0_32 = arith.constant 0 : index
    %c0_33 = arith.constant 0 : index
    %111 = vector.load %arg2[%c2, %c0_32, %c0_33] : memref<4x32x192xf32, #tpu.memory_space<vmem>>, vector<1x32x192xf32>
    %112 = vector.shape_cast %111 : vector<1x32x192xf32> to vector<32x192xf32>
    %cst_34 = arith.constant dense<0.000000e+00> : vector<16x192xf32>
    %113 = tpu.matmul %110, %112, %cst_34 {dimension_numbers = #tpu.dot_dimension_numbers<[1], [0], [0], [1], [0, 0, 1, 1], [], []>} : vector<16x32xf32>, vector<32x192xf32>, vector<16x192xf32> -> vector<16x192xf32>
    %114 = vector.extract_strided_slice %2 {offsets = [2, 0], sizes = [1, 192], strides = [1, 1]} : vector<8x192xf32> to vector<1x192xf32>
    %115 = vector.broadcast %114 : vector<1x192xf32> to vector<16x192xf32>
    %116 = arith.addf %113, %115 : vector<16x192xf32>
    %117 = vector.extract_strided_slice %116 {offsets = [0, 0], sizes = [16, 32], strides = [1, 1]} : vector<16x192xf32> to vector<16x32xf32>
    %c3 = arith.constant 3 : index
    %c0_35 = arith.constant 0 : index
    %c0_36 = arith.constant 0 : index
    %118 = vector.load %arg2[%c3, %c0_35, %c0_36] : memref<4x32x192xf32, #tpu.memory_space<vmem>>, vector<1x32x192xf32>
    %119 = vector.shape_cast %118 : vector<1x32x192xf32> to vector<32x192xf32>
    %cst_37 = arith.constant dense<0.000000e+00> : vector<16x192xf32>
    %120 = tpu.matmul %117, %119, %cst_37 {dimension_numbers = #tpu.dot_dimension_numbers<[1], [0], [0], [1], [0, 0, 1, 1], [], []>} : vector<16x32xf32>, vector<32x192xf32>, vector<16x192xf32> -> vector<16x192xf32>
    %121 = vector.extract_strided_slice %2 {offsets = [3, 0], sizes = [1, 192], strides = [1, 1]} : vector<8x192xf32> to vector<1x192xf32>
    %122 = vector.broadcast %121 : vector<1x192xf32> to vector<16x192xf32>
    %123 = arith.addf %120, %122 : vector<16x192xf32>
    %124 = vector.extract_strided_slice %123 {offsets = [0, 0], sizes = [16, 128], strides = [1, 1]} : vector<16x192xf32> to vector<16x128xf32>
    %125 = vector.shape_cast %124 : vector<16x128xf32> to vector<2x8x128xf32>
    %126 = vector.extract_strided_slice %123 {offsets = [0, 128], sizes = [16, 32], strides = [1, 1]} : vector<16x192xf32> to vector<16x32xf32>
    %127 = vector.shape_cast %126 : vector<16x32xf32> to vector<2x8x32xf32>
    %128 = vector.extract_strided_slice %123 {offsets = [0, 160], sizes = [16, 32], strides = [1, 1]} : vector<16x192xf32> to vector<16x32xf32>
    %129 = vector.shape_cast %128 : vector<16x32xf32> to vector<2x8x32xf32>
    "tpu.trace_start"() <{level = 10 : i32, message = "bqc,bkc->bqk"}> : () -> ()
    %cst_38 = arith.constant dense<0.000000e+00> : vector<2x8x8xf32>
    %130 = tpu.matmul %127, %129, %cst_38 {dimension_numbers = #tpu.dot_dimension_numbers<[2], [2], [1], [1], [0, 0, 0, 1, 1, 1], [0], [0]>} : vector<2x8x32xf32>, vector<2x8x32xf32>, vector<2x8x8xf32> -> vector<2x8x8xf32>
    "tpu.trace_stop"() : () -> ()
    %cst_39 = arith.constant dense<0xFF800000> : vector<2x8xf32>
    %131 = vector.multi_reduction <maximumf>, %130, %cst_39 [2] : vector<2x8x8xf32> to vector<2x8xf32>
    %132 = vector.shape_cast %131 : vector<2x8xf32> to vector<2x8x1xf32>
    %133 = vector.broadcast %132 : vector<2x8x1xf32> to vector<2x8x8xf32>
    %134 = arith.subf %130, %133 : vector<2x8x8xf32>
    %135 = math.exp %134 : vector<2x8x8xf32>
    %cst_40 = arith.constant dense<0.000000e+00> : vector<2x8xf32>
    %136 = vector.multi_reduction <add>, %135, %cst_40 [2] : vector<2x8x8xf32> to vector<2x8xf32>
    %137 = vector.shape_cast %136 : vector<2x8xf32> to vector<2x8x1xf32>
    %138 = tpu.reciprocal %137 {approx = true} : vector<2x8x1xf32> -> vector<2x8x1xf32>
    %139 = vector.broadcast %138 : vector<2x8x1xf32> to vector<2x8x8xf32>
    %140 = arith.mulf %135, %139 : vector<2x8x8xf32>
    "tpu.trace_start"() <{level = 10 : i32, message = "bqk,bkc->bqc"}> : () -> ()
    %cst_41 = arith.constant dense<0.000000e+00> : vector<2x8x128xf32>
    %141 = tpu.matmul %140, %125, %cst_41 {dimension_numbers = #tpu.dot_dimension_numbers<[2], [1], [1], [2], [0, 0, 0, 1, 1, 2], [0], [0]>} : vector<2x8x8xf32>, vector<2x8x128xf32>, vector<2x8x128xf32> -> vector<2x8x128xf32>
    "tpu.trace_stop"() : () -> ()
    %c0_42 = arith.constant 0 : index
    %c0_43 = arith.constant 0 : index
    %c0_44 = arith.constant 0 : index
    %142 = vector.load %arg4[%c0_42, %c0_43, %c0_44] : memref<2x8x128xf32, #tpu.memory_space<vmem>>, vector<2x8x128xf32>
    tpu.vector_store %arg4[%c0_42, %c0_43, %c0_44], %141 {strides = array<i32>} : memref<2x8x128xf32, #tpu.memory_space<vmem>>, vector<2x8x128xf32>,
    return
  }
  func.func @transform_0(%arg0: i32) -> (i32, i32, i32) {
    %c0_i32 = arith.constant 0 : i32
    %c0_i32_0 = arith.constant 0 : i32
    %c0_i32_1 = arith.constant 0 : i32
    return %arg0, %c0_i32, %c0_i32_0 : i32, i32, i32
  }
  func.func @transform_1(%arg0: i32) -> (i32, i32, i32) {
    %c0_i32 = arith.constant 0 : i32
    %c0_i32_0 = arith.constant 0 : i32
    %c0_i32_1 = arith.constant 0 : i32
    %c0_i32_2 = arith.constant 0 : i32
    return %c0_i32, %c0_i32_0, %c0_i32_1 : i32, i32, i32
  }
  func.func @transform_2(%arg0: i32) -> (i32, i32) {
    %c0_i32 = arith.constant 0 : i32
    %c0_i32_0 = arith.constant 0 : i32
    %c0_i32_1 = arith.constant 0 : i32
    return %c0_i32, %c0_i32_0 : i32, i32
  }
  func.func @transform_3(%arg0: i32) -> (i32, i32, i32) {
    %c0_i32 = arith.constant 0 : i32
    %c0_i32_0 = arith.constant 0 : i32
    %c0_i32_1 = arith.constant 0 : i32
    return %arg0, %c0_i32, %c0_i32_0 : i32, i32, i32
  }
}

</mosaic_0001>

<bundles_post_ra>
// kernel: tpu_custom_call.1
= control target key start
LH: loop header
LB: loop body
LE: loop exit
PB: predicated region body
PF: predicated region fallthrough
CT: control target
= control target key end

     0   :  { %8 = vsyncpa [#allocation3], 0  ;;  %s2771_s0 = inlined_call_operand.hbm [shape: f32[2,8,32], index: 0, kind: input, shape index: {}]   ;;  %s2772_s1 = inlined_call_operand.hbm [shape: f32[4,32,192], index: 1, kind: input, shape index: {}]   ;;  %s2773_s2 = inlined_call_operand.hbm [shape: f32[8,192], index: 2, kind: input, shape index: {}]   ;;  %s2774_s3 = inlined_call_operand.hbm [shape: f32[2,8,128], index: 3, kind: output, shape index: {}]  }
   0x1   :  { %9 = vsyncpa [#allocation6], 0 }
   0x2   :  { %10 = vsyncpa [#allocation4], 0  ;;  %s2506_s12 = smov [#allocation5]  }
   0x3   :  { %s28_s13 = sshll.u32 %s2506_s12, 4  ;;  %s29_s13 = int_to_ptr.vmem [resolvable:$true] %s28_s13 }
   0x4   :  { %s2428_s14 = scalar_lea.vmem %s29_s13, 4096  ;;  %p2433_p1 = scmp.lt.s32.totalorder %s29_s13, %s29_s13 }
   0x5   :  { %p2429_p0 = scmp.ne.s32.totalorder %s29_s13, %s2428_s14  ;;  %p2434_p2 = scmp.lt.s32.totalorder %s2428_s14, %s2428_s14 }
   0x7   :  { %p2435_p3 = por %p2434_p2, %p2433_p1 }
   0x9   :  { %p2436_p4 = pnand %p2435_p3, %p2429_p0 }
   0xb   :  { %2439 = shalt.err (!%p2436_p4)
}
   0xc   :  { %s2507_s15 = smov 256   ;;  %s2508_s16 = smov 16  }
   0xd   :  { %34 = dma.hbm_to_vmem [thread:$0]  %s2772_s1, 4096, %s29_s13, [#allocation6], %s2507_s15, %s2507_s15, %s2508_s16  }
   0xe   :  { %s2509_s19 = smov [#allocation2]  }
   0xf   :  { %s16_s20 = sshll.u32 %s2509_s19, 4  ;;  %s17_s20 = int_to_ptr.vmem [resolvable:$true] %s16_s20 }
  0x10   :  { %s2448_s21 = scalar_lea.vmem %s17_s20, 256  ;;  %p2453_p6 = scmp.lt.s32.totalorder %s17_s20, %s17_s20 }
  0x11   :  { %p2449_p5 = scmp.ne.s32.totalorder %s17_s20, %s2448_s21  ;;  %p2454_p7 = scmp.lt.s32.totalorder %s2448_s21, %s2448_s21 }
  0x13   :  { %p2455_p8 = por %p2454_p7, %p2453_p6 }
  0x15   :  { %p2456_p9 = pnand %p2455_p8, %p2449_p5 }
  0x17   :  { %2459 = shalt.err (!%p2456_p9)
}
  0x18   :  { %s2510_s22 = smov 128   ;;  %s2511_s23 = smov 8  }
  0x19   :  { %22 = dma.hbm_to_vmem [thread:$0]  %s2771_s0, 256, %s17_s20, [#allocation3], %s2510_s22, %s2510_s22, %s2511_s23  }
  0x1a   :  { %s2512_s1 = smov [#allocation7]  }
  0x1b   :  { %s41_s26 = sshll.u32 %s2512_s1, 4  ;;  %s42_s26 = int_to_ptr.vmem [resolvable:$true] %s41_s26 }
  0x1c   :  { %s2468_s27 = scalar_lea.vmem %s42_s26, 256  ;;  %p2473_p11 = scmp.lt.s32.totalorder %s42_s26, %s42_s26 }
  0x1d   :  { %p2469_p10 = scmp.ne.s32.totalorder %s42_s26, %s2468_s27  ;;  %p2474_p12 = scmp.lt.s32.totalorder %s2468_s27, %s2468_s27 }
  0x1f   :  { %p2475_p13 = por %p2474_p12, %p2473_p11 }
  0x21   :  { %p2476_p0 = pnand %p2475_p13, %p2469_p10 }
  0x23   :  { %2479 = shalt.err (!%p2476_p0)
}
  0x24   :  { %44 = dma.hbm_to_vmem [thread:$0]  %s2773_s2, 256, %s42_s26, [#allocation6]  }
  0x25   :  { %2500 = dma.done.wait [#allocation3], 256  }
  0x26   :  { %2501 = vsyncadd [#allocation3], 4294967040 }
  0x27   :  { %2502 = dma.done.wait [#allocation6], 4352  }
  0x28   :  { %2503 = vsyncadd [#allocation6], 4294962944  ;;  %v2513_v0 = vmov 0.0   ;;  %v65_v1 = vld [vmem:[#allocation5 + $0x38] sm:$0xff]  ;;  %v64_v2 = vld [vmem:[#allocation5 + $0x30] sm:$0xff]  ;;  %vm70_vm0 = vcmask 261120   ;;  %v66_v11 = vlaneseq }
  0x29   :  { %141 = vmatprep.mubr.f32.mxu0 %v2513_v0  ;;  %2254 = vmatprep.subr.mxu1 %v2513_v0  ;;  %v63_v3 = vld [vmem:[#allocation5 + $0x28] sm:$0xff]  ;;  %v62_v4 = vld [vmem:[#allocation5 + $0x20] sm:$0xff]  ;;  %v61_v5 = vld [vmem:[#allocation5 + $0x18] sm:$0xff]  ;;  %vm2514_vm1 = vmmov 0   ;;  %s2515_s0 = smov 96   ;;  %vm155_vm2 = vcmask 64512  }
  0x2a   :  { %101 = vmatprep.subr.mxu0 %v65_v1  ;;  %v60_v6 = vld [vmem:[#allocation5 + $0x10] sm:$0xff]  ;;  %v59_v7 = vld [vmem:[#allocation5 + $0x8] sm:$0xff]  ;;  %v58_v8 = vld [vmem:[#allocation5] sm:$0xff]  ;;  %v2573_v12 = vshrl.u32 %v66_v11, 7  ;;  %2256 = vmatprep.mubr.msk.f32.mxu1 %vm2514_vm1, %v2513_v0  ;;  %s2516_s2 = smov 64   ;;  %s2517_s30 = smov 88  }
  0x2b   :  { %102 = vmatpush1.msra.mxu0 %v64_v2  ;;  %v2563_v9 = vld [vmem:[#allocation2] sm:$0xff]  ;;  %v2569_v10 = vld [vmem:[#allocation2 + $0x8] sm:$0xff]  ;;  %v2580_v14 = vld [vmem:[#allocation7] sm:$0xff]  ;;  %s2518_s4 = smov 120   ;;  %s2519_s5 = smov 56   ;;  %vm1497_vm3 = vcmask 130048  }
  0x2c   :  { %103 = vmatprep.subr.mxu0 %v63_v3  ;;  %v68_v13 = vsub.s32 0, %v2573_v12  ;;  %s2520_s6 = smov 112   ;;  %s2521_s7 = smov 80   ;;  %vm1500_vm4 = vcmask 195584  }
  0x2d   :  { %104 = vmatpush1.msra.mxu0 %v62_v4  ;;  %s2522_s8 = smov 48   ;;  %s2523_s9 = smov 72  }
  0x2e   :  { %105 = vmatprep.subr.mxu0 %v61_v5  ;;  %v69_v15 = vrot.slane %v2580_v14, %v68_v13  ;;  %s2524_s10 = smov 104   ;;  %s2525_s11 = smov 40  }
  0x2f   :  { %106 = vmatpush1.msra.mxu0 %v60_v6  ;;  %s2526_s12 = smov 24   ;;  %s2527_s13 = smov [#allocation8]  }
  0x30   :  { %107 = vmatprep.subr.mxu0 %v59_v7  ;;  %s2163_s14 = sshll.u32 %s2527_s13, 4  ;;  %s2164_s14 = int_to_ptr.vmem [resolvable:$true] %s2163_s14 }
  0x31   :  { %108 = vmatpush1.msra.mxu0 %v58_v8  ;;  %s2480_s15 = scalar_lea.vmem %s2164_s14, 256  ;;  %p2485_p2 = scmp.lt.s32.totalorder %s2164_s14, %s2164_s14 }
  0x32   :  { %2176 = vmatmul.mubr.msk.f32.vlgmr.msra.gmra.mxu0 %vm70_vm0, %v2563_v9  ;;  %2269 = vmatprep.subr.mxu0 %v2513_v0  ;;  %p2481_p1 = scmp.ne.s32.totalorder %s2164_s14, %s2480_s15  ;;  %p2486_p3 = scmp.lt.s32.totalorder %s2480_s15, %s2480_s15 }
  0x33   :  { %146 = vmatprep.mubr.f32.mxu0 %v2513_v0 }
  0x34   :  { %p2487_p4 = por %p2486_p3, %p2485_p2 }
  0x36   :  { %2177 = vmatmul.mubr.msk.f32.gmra.mxu0 %vm70_vm0, %v2569_v10  ;;  %p2488_p5 = pnand %p2487_p4, %p2481_p1 }
  0x37   :  { %2271 = vmatprep.mubr.msk.f32.mxu0 %vm2514_vm1, %v2513_v0 }
  0xf2   :  { %v143_v16 = vpop.f32.mrf.mxu0 }
  0xf3   :  { %v2583_v17 = vadd.f32 %v143_v16, %v69_v15 }
  0xf4   :  { %v145_v18 = vpop.f32.mrf.mxu0 }
  0xf5   :  { %153 = vrot.lane.b32.xlu0 %v2583_v17, %s2515_s0 }
  0xf6   :  { %v148_v19 = vpop.f32.mrf.mxu0 }
  0xf7   :  { %v2587_v20 = vadd.f32 %v148_v19, %v69_v15 }
  0xf8   :  { %v150_v21 = vpop.f32.mrf.mxu0 }
  0xf9   :  { %231 = vrot.lane.b32.xlu0 %v2587_v20, %s2515_s0 }
 0x167   :  { %v154_v22 = vpop.permute.xlu0 %153 }
 0x168   :  { %2255 = vmatpush3.xpose.msk.msra.mxu1 %vm155_vm2, %v154_v22 }
 0x169   :  { %2259 = vmatprep.subr.mxu1 %v2513_v0 }
 0x16b   :  { %2257 = vmatmul.mubr.msk.f32.vlgmr.msra.gmra.mxu1 %vm155_vm2, %v2583_v17  ;;  %v232_v23 = vpop.permute.xlu0 %231 }
 0x16c   :  { %2260 = vmatpush3.xpose.msk.msra.mxu1 %vm155_vm2, %v232_v23  ;;  %2261 = vmatprep.mubr.msk.f32.mxu1 %vm2514_vm1, %v2513_v0 }
 0x16d   :  { %2264 = vmatprep.subr.mxu1 %v2513_v0 }
 0x16f   :  { %2262 = vmatmul.mubr.msk.f32.vlgmr.msra.gmra.mxu1 %vm155_vm2, %v2587_v20 }
 0x170   :  { %2266 = vmatprep.mubr.msk.f32.mxu1 %vm2514_vm1, %v2513_v0 }
 0x22b   :  { %v226_v24 = vpop.f32.mrf.mxu1 }
 0x22c   :  { %v307_v25 = vsel %vm155_vm2, %v226_v24, -inf }
 0x22d   :  { %308 = vmax.xlane.f32.xlu1 %v307_v25  ;;  %v2258_v26 = vpop.f32.mrf.mxu1 }
 0x22f   :  { %v303_v27 = vpop.f32.mrf.mxu1 }
 0x230   :  { %v310_v28 = vsel %vm155_vm2, %v303_v27, -inf }
 0x231   :  { %311 = vmax.xlane.f32.xlu1 %v310_v28  ;;  %v2263_v29 = vpop.f32.mrf.mxu1 }
 0x242   :  { %329 = vrot.lane.b32.xlu1 %v2583_v17, %s2516_s2 }
 0x246   :  { %483 = vrot.lane.b32.xlu1 %v2583_v17, %s2517_s30 }
 0x24a   :  { %405 = vrot.lane.b32.xlu1 %v2587_v20, %s2516_s2 }
 0x24e   :  { %481 = vrot.lane.b32.xlu1 %v2583_v17, %s2518_s4 }
 0x2b6   :  { %v309_v30 = vpop.xlane.xlu1 %308 }
 0x2b7   :  { %v313_v31 = vsub.f32 %v226_v24, %v309_v30 }
 0x2b9   :  { %v315_v32 = vmul.f32 1.442695, %v313_v31 }
 0x2ba   :  { %v312_v33 = vpop.xlane.xlu1 %311 }
 0x2bb   :  { %2376 = vpow2.f32 %v315_v32  ;;  %v314_v34 = vsub.f32 %v303_v27, %v312_v33 }
 0x2bd   :  { %v317_v35 = vmul.f32 1.442695, %v314_v34 }
 0x2be   :  { %v330_v36 = vpop.permute.xlu1 %329 }
 0x2bf   :  { %2378 = vpow2.f32 %v317_v35  ;;  %2265 = vmatpush3.msra.mxu1 %v330_v36 }
 0x2c0   :  { %2274 = vmatprep.subr.mxu1 %v2513_v0 }
 0x2c2   :  { %v484_v37 = vpop.permute.xlu1 %483 }
 0x2c6   :  { %v406_v38 = vpop.permute.xlu1 %405 }
 0x2c7   :  { %2270 = vmatpush3.msra.mxu0 %v406_v38 }
 0x2c8   :  { %v2377_v39 = vpop.eup %2376  ;;  %2279 = vmatprep.subr.mxu0 %v2513_v0 }
 0x2c9   :  { %v319_v40 = vsel %vm155_vm2, %v2377_v39, 0.0 }
 0x2ca   :  { %320 = vadd.xlane.f32.xlu0 %v319_v40  ;;  %v482_v43 = vpop.permute.xlu1 %481 }
 0x2cc   :  { %v2379_v41 = vpop.eup %2378 }
 0x2cd   :  { %v322_v42 = vsel %vm155_vm2, %v2379_v41, 0.0 }
 0x2ce   :  { %323 = vadd.xlane.f32.xlu1 %v322_v42 }
 0x2df   :  { %559 = vrot.lane.b32.xlu1 %v2587_v20, %s2518_s4 }
 0x2e0   :  { %561 = vrot.lane.b32.xlu0 %v2587_v20, %s2517_s30 }
 0x353   :  { %v321_v44 = vpop.xlane.xlu0 %320 }
 0x354   :  { %2380 = vrcp.f32 %v321_v44 }
 0x357   :  { %v324_v45 = vpop.xlane.xlu1 %323  ;;  %v562_v50 = vpop.permute.xlu0 %561 }
 0x358   :  { %2382 = vrcp.f32 %v324_v45 }
 0x35b   :  { %v560_v51 = vpop.permute.xlu1 %559 }
 0x361   :  { %v2381_v46 = vpop.eup %2380 }
 0x362   :  { %v327_v47 = vmul.f32 %v2381_v46, %v2377_v39 }
 0x364   :  { %2267 = vmatmul.mubr.msk.f32.vlgmr.msra.gmra.mxu1 %vm155_vm2, %v327_v47 }
 0x365   :  { %v2383_v48 = vpop.eup %2382  ;;  %2275 = vmatpush3.xpose.msk.msra.mxu1 %vm155_vm2, %v484_v37  ;;  %2276 = vmatprep.mubr.msk.f32.mxu1 %vm2514_vm1, %v2513_v0 }
 0x366   :  { %v328_v49 = vmul.f32 %v2383_v48, %v2379_v41  ;;  %2284 = vmatprep.subr.mxu1 %v2513_v0 }
 0x368   :  { %2272 = vmatmul.mubr.msk.f32.vlgmr.msra.gmra.mxu0 %vm155_vm2, %v328_v49  ;;  %2277 = vmatmul.mubr.msk.f32.vlgmr.msra.gmra.mxu1 %vm155_vm2, %v482_v43 }
 0x369   :  { %2280 = vmatpush3.xpose.msk.msra.mxu0 %vm155_vm2, %v562_v50  ;;  %2281 = vmatprep.mubr.msk.f32.mxu0 %vm2514_vm1, %v2513_v0 }
 0x36a   :  { %2289 = vmatprep.subr.mxu0 %v2513_v0  ;;  %2286 = vmatprep.mubr.msk.f32.mxu1 %vm2514_vm1, %v2513_v0 }
 0x36c   :  { %2282 = vmatmul.mubr.msk.f32.vlgmr.msra.gmra.mxu0 %vm155_vm2, %v560_v51 }
 0x36d   :  { %2291 = vmatprep.mubr.msk.f32.mxu0 %vm2514_vm1, %v2513_v0 }
 0x424   :  { %v2631_v52 = vpop.f32.mrf.mxu1 }
 0x426   :  { %v2268_v53 = vpop.f32.mrf.mxu1 }
 0x428   :  { %v2633_v54 = vpop.f32.mrf.mxu0  ;;  %v555_v55 = vpop.f32.mrf.mxu1 }
 0x429   :  { %v637_v56 = vsel %vm155_vm2, %v555_v55, -inf }
 0x42a   :  { %v2273_v57 = vpop.f32.mrf.mxu0  ;;  %638 = vmax.xlane.f32.xlu1 %v637_v56  ;;  %v2278_v58 = vpop.f32.mrf.mxu1 }
 0x42c   :  { %v633_v59 = vpop.f32.mrf.mxu0 }
 0x42d   :  { %v640_v60 = vsel %vm155_vm2, %v633_v59, -inf }
 0x42e   :  { %641 = vmax.xlane.f32.xlu0 %v640_v60  ;;  %v2283_v61 = vpop.f32.mrf.mxu0 }
 0x43b   :  { %659 = vrot.lane.b32.xlu1 %v2583_v17, %s2519_s5 }
 0x43f   :  { %735 = vrot.lane.b32.xlu1 %v2587_v20, %s2519_s5 }
 0x443   :  { %811 = vrot.lane.b32.xlu1 %v2583_v17, %s2520_s6 }
 0x444   :  { %813 = vrot.lane.b32.xlu0 %v2583_v17, %s2521_s7 }
 0x448   :  { %891 = vrot.lane.b32.xlu0 %v2587_v20, %s2521_s7 }
 0x4b3   :  { %v639_v62 = vpop.xlane.xlu1 %638 }
 0x4b4   :  { %v643_v63 = vsub.f32 %v555_v55, %v639_v62 }
 0x4b6   :  { %v645_v1 = vmul.f32 1.442695, %v643_v63 }
 0x4b7   :  { %v660_v2 = vpop.permute.xlu1 %659  ;;  %v642_v3 = vpop.xlane.xlu0 %641 }
 0x4b8   :  { %2384 = vpow2.f32 %v645_v1  ;;  %v644_v4 = vsub.f32 %v633_v59, %v642_v3  ;;  %2285 = vmatpush3.msra.mxu1 %v660_v2 }
 0x4b9   :  { %2294 = vmatprep.subr.mxu1 %v2513_v0 }
 0x4ba   :  { %v647_v5 = vmul.f32 1.442695, %v644_v4 }
 0x4bb   :  { %v736_v6 = vpop.permute.xlu1 %735  ;;  %v814_v21 = vpop.permute.xlu0 %813 }
 0x4bc   :  { %2386 = vpow2.f32 %v647_v5  ;;  %2290 = vmatpush3.msra.mxu0 %v736_v6 }
 0x4bd   :  { %2299 = vmatprep.subr.mxu0 %v2513_v0 }
 0x4bf   :  { %v812_v15 = vpop.permute.xlu1 %811  ;;  %v892_v25 = vpop.permute.xlu0 %891 }
 0x4c5   :  { %v2385_v7 = vpop.eup %2384 }
 0x4c6   :  { %v649_v8 = vsel %vm155_vm2, %v2385_v7, 0.0 }
 0x4c7   :  { %650 = vadd.xlane.f32.xlu1 %v649_v8 }
 0x4c9   :  { %v2387_v11 = vpop.eup %2386 }
 0x4ca   :  { %v652_v13 = vsel %vm155_vm2, %v2387_v11, 0.0 }
 0x4cb   :  { %653 = vadd.xlane.f32.xlu1 %v652_v13 }
 0x4dc   :  { %889 = vrot.lane.b32.xlu1 %v2587_v20, %s2520_s6 }
 0x550   :  { %v651_v16 = vpop.xlane.xlu1 %650 }
 0x551   :  { %2388 = vrcp.f32 %v651_v16 }
 0x554   :  { %v654_v18 = vpop.xlane.xlu1 %653 }
 0x555   :  { %2390 = vrcp.f32 %v654_v18 }
 0x558   :  { %v890_v26 = vpop.permute.xlu1 %889 }
 0x55e   :  { %v2389_v19 = vpop.eup %2388 }
 0x55f   :  { %v657_v22 = vmul.f32 %v2389_v19, %v2385_v7 }
 0x561   :  { %2287 = vmatmul.mubr.msk.f32.vlgmr.msra.gmra.mxu1 %vm155_vm2, %v657_v22 }
 0x562   :  { %v2391_v23 = vpop.eup %2390  ;;  %2295 = vmatpush3.xpose.msk.msra.mxu1 %vm155_vm2, %v814_v21  ;;  %2296 = vmatprep.mubr.msk.f32.mxu1 %vm2514_vm1, %v2513_v0 }
 0x563   :  { %v658_v24 = vmul.f32 %v2391_v23, %v2387_v11  ;;  %2304 = vmatprep.subr.mxu1 %v2513_v0 }
 0x565   :  { %2292 = vmatmul.mubr.msk.f32.vlgmr.msra.gmra.mxu0 %vm155_vm2, %v658_v24  ;;  %2297 = vmatmul.mubr.msk.f32.vlgmr.msra.gmra.mxu1 %vm155_vm2, %v812_v15 }
 0x566   :  { %2300 = vmatpush3.xpose.msk.msra.mxu0 %vm155_vm2, %v892_v25  ;;  %2301 = vmatprep.mubr.msk.f32.mxu0 %vm2514_vm1, %v2513_v0 }
 0x567   :  { %2309 = vmatprep.subr.mxu0 %v2513_v0  ;;  %2306 = vmatprep.mubr.msk.f32.mxu1 %vm2514_vm1, %v2513_v0 }
 0x569   :  { %2302 = vmatmul.mubr.msk.f32.vlgmr.msra.gmra.mxu0 %vm155_vm2, %v890_v26 }
 0x56a   :  { %2311 = vmatprep.mubr.msk.f32.mxu0 %vm2514_vm1, %v2513_v0 }
 0x621   :  { %v2663_v27 = vpop.f32.mrf.mxu1 }
 0x623   :  { %v2288_v28 = vpop.f32.mrf.mxu1 }
 0x625   :  { %v2665_v29 = vpop.f32.mrf.mxu0  ;;  %v885_v30 = vpop.f32.mrf.mxu1 }
 0x626   :  { %v967_v31 = vsel %vm155_vm2, %v885_v30, -inf }
 0x627   :  { %968 = vmax.xlane.f32.xlu0 %v967_v31  ;;  %v2293_v32 = vpop.f32.mrf.mxu0  ;;  %v2298_v33 = vpop.f32.mrf.mxu1 }
 0x629   :  { %v963_v34 = vpop.f32.mrf.mxu0 }
 0x62a   :  { %v970_v35 = vsel %vm155_vm2, %v963_v34, -inf }
 0x62b   :  { %971 = vmax.xlane.f32.xlu1 %v970_v35  ;;  %v2303_v36 = vpop.f32.mrf.mxu0 }
 0x63c   :  { %989 = vrot.lane.b32.xlu1 %v2583_v17, %s2522_s8 }
 0x63d   :  { %1143 = vrot.lane.b32.xlu0 %v2583_v17, %s2523_s9 }
 0x640   :  { %1065 = vrot.lane.b32.xlu1 %v2587_v20, %s2522_s8 }
 0x644   :  { %1141 = vrot.lane.b32.xlu1 %v2583_v17, %s2524_s10 }
 0x648   :  { %1219 = vrot.lane.b32.xlu1 %v2587_v20, %s2524_s10 }
 0x6b0   :  { %v969_v37 = vpop.xlane.xlu0 %968 }
 0x6b1   :  { %v973_v38 = vsub.f32 %v885_v30, %v969_v37 }
 0x6b3   :  { %v975_v39 = vmul.f32 1.442695, %v973_v38 }
 0x6b4   :  { %v972_v40 = vpop.xlane.xlu1 %971  ;;  %v1144_v49 = vpop.permute.xlu0 %1143 }
 0x6b5   :  { %2392 = vpow2.f32 %v975_v39  ;;  %v974_v41 = vsub.f32 %v963_v34, %v972_v40 }
 0x6b7   :  { %v977_v42 = vmul.f32 1.442695, %v974_v41 }
 0x6b8   :  { %v990_v43 = vpop.permute.xlu1 %989 }
 0x6b9   :  { %2394 = vpow2.f32 %v977_v42  ;;  %2305 = vmatpush3.msra.mxu1 %v990_v43 }
 0x6ba   :  { %2314 = vmatprep.subr.mxu1 %v2513_v0 }
 0x6bc   :  { %v1066_v44 = vpop.permute.xlu1 %1065 }
 0x6bd   :  { %2310 = vmatpush3.msra.mxu0 %v1066_v44 }
 0x6be   :  { %2319 = vmatprep.subr.mxu0 %v2513_v0 }
 0x6c0   :  { %v1142_v57 = vpop.permute.xlu1 %1141 }
 0x6c2   :  { %v2393_v45 = vpop.eup %2392 }
 0x6c3   :  { %v979_v46 = vsel %vm155_vm2, %v2393_v45, 0.0 }
 0x6c4   :  { %980 = vadd.xlane.f32.xlu0 %v979_v46  ;;  %v1220_v60 = vpop.permute.xlu1 %1219 }
 0x6c6   :  { %v2395_v47 = vpop.eup %2394 }
 0x6c7   :  { %v982_v48 = vsel %vm155_vm2, %v2395_v47, 0.0 }
 0x6c8   :  { %983 = vadd.xlane.f32.xlu0 %v982_v48 }
 0x6de   :  { %1221 = vrot.lane.b32.xlu0 %v2587_v20, %s2523_s9 }
 0x74d   :  { %v981_v50 = vpop.xlane.xlu0 %980 }
 0x74e   :  { %2396 = vrcp.f32 %v981_v50 }
 0x751   :  { %v984_v51 = vpop.xlane.xlu0 %983 }
 0x752   :  { %2398 = vrcp.f32 %v984_v51 }
 0x755   :  { %v1222_v59 = vpop.permute.xlu0 %1221 }
 0x75b   :  { %v2397_v53 = vpop.eup %2396 }
 0x75c   :  { %v987_v55 = vmul.f32 %v2397_v53, %v2393_v45 }
 0x75e   :  { %2307 = vmatmul.mubr.msk.f32.vlgmr.msra.gmra.mxu1 %vm155_vm2, %v987_v55 }
 0x75f   :  { %v2399_v56 = vpop.eup %2398  ;;  %2315 = vmatpush3.xpose.msk.msra.mxu1 %vm155_vm2, %v1144_v49  ;;  %2316 = vmatprep.mubr.msk.f32.mxu1 %vm2514_vm1, %v2513_v0 }
 0x760   :  { %v988_v58 = vmul.f32 %v2399_v56, %v2395_v47  ;;  %2324 = vmatprep.subr.mxu1 %v2513_v0 }
 0x762   :  { %2312 = vmatmul.mubr.msk.f32.vlgmr.msra.gmra.mxu0 %vm155_vm2, %v988_v58  ;;  %2317 = vmatmul.mubr.msk.f32.vlgmr.msra.gmra.mxu1 %vm155_vm2, %v1142_v57 }
 0x763   :  { %2320 = vmatpush3.xpose.msk.msra.mxu0 %vm155_vm2, %v1222_v59  ;;  %2321 = vmatprep.mubr.msk.f32.mxu0 %vm2514_vm1, %v2513_v0  ;;  %v1552_v59 = vld [vmem:[#allocation5 + $0x78] sm:$0xff] }
 0x764   :  { %2329 = vmatprep.subr.mxu0 %v2513_v0  ;;  %2326 = vmatprep.mubr.msk.f32.mxu1 %vm2514_vm1, %v2513_v0 }
 0x766   :  { %2322 = vmatmul.mubr.msk.f32.vlgmr.msra.gmra.mxu0 %vm155_vm2, %v1220_v60  ;;  %v1550_v60 = vld [vmem:[#allocation5 + $0x68] sm:$0xff] }
 0x767   :  { %2331 = vmatprep.mubr.msk.f32.mxu0 %vm2514_vm1, %v2513_v0 }
 0x81e   :  { %v1061_v61 = vpop.f32.mrf.mxu1 }
 0x820   :  { %v2308_v62 = vpop.f32.mrf.mxu1 }
 0x821   :  { %v1548_v62 = vld [vmem:[#allocation5 + $0x58] sm:$0xff] }
 0x822   :  { %v1137_v63 = vpop.f32.mrf.mxu0  ;;  %v1215_v1 = vpop.f32.mrf.mxu1 }
 0x823   :  { %v1297_v2 = vsel %vm155_vm2, %v1215_v1, -inf }
 0x824   :  { %1298 = vmax.xlane.f32.xlu0 %v1297_v2  ;;  %v2313_v3 = vpop.f32.mrf.mxu0  ;;  %v2318_v4 = vpop.f32.mrf.mxu1  ;;  %v1545_v2 = vld [vmem:[#allocation5 + $0x40] sm:$0xff] }
 0x825   :  { %v1648_v3 = vld [vmem:[#allocation5 + $0xb8] sm:$0xff]  ;;  %v1647_v4 = vld [vmem:[#allocation5 + $0xb0] sm:$0xff] }
 0x826   :  { %v1293_v5 = vpop.f32.mrf.mxu0 }
 0x827   :  { %v1300_v6 = vsel %vm155_vm2, %v1293_v5, -inf }
 0x828   :  { %1301 = vmax.xlane.f32.xlu1 %v1300_v6  ;;  %v2323_v7 = vpop.f32.mrf.mxu0 }
 0x839   :  { %1319 = vrot.lane.b32.xlu1 %v2583_v17, %s2525_s11 }
 0x83d   :  { %1473 = vrot.lane.b32.xlu1 %v2663_v27, %s2511_s23 }
 0x841   :  { %1481 = vrot.lane.b32.xlu1 %v1061_v61, %s2508_s16  ;;  %v1549_v61 = vld [vmem:[#allocation5 + $0x60] sm:$0xff] }
 0x845   :  { %1475 = vrot.lane.b32.xlu1 %v2665_v29, %s2511_s23 }
 0x8ad   :  { %v1299_v8 = vpop.xlane.xlu0 %1298 }
 0x8ae   :  { %v1303_v11 = vsub.f32 %v1215_v1, %v1299_v8  ;;  %v1546_v1 = vld [vmem:[#allocation5 + $0x48] sm:$0xff] }
 0x8b0   :  { %v1305_v13 = vmul.f32 1.442695, %v1303_v11 }
 0x8b1   :  { %v1302_v15 = vpop.xlane.xlu1 %1301 }
 0x8b2   :  { %2400 = vpow2.f32 %v1305_v13  ;;  %v1304_v16 = vsub.f32 %v1293_v5, %v1302_v15  ;;  %v1646_v5 = vld [vmem:[#allocation5 + $0xa8] sm:$0xff] }
 0x8b4   :  { %v1307_v18 = vmul.f32 1.442695, %v1304_v16  ;;  %v1534_v16 = vsub.s32 4, %v2573_v12 }
 0x8b5   :  { %v1320_v19 = vpop.permute.xlu1 %1319 }
 0x8b6   :  { %2402 = vpow2.f32 %v1307_v18  ;;  %2325 = vmatpush3.msra.mxu1 %v1320_v19  ;;  %v1540_v18 = vsub.s32 5, %v2573_v12  ;;  %v1535_v19 = vrot.slane %v2580_v14, %v1534_v16 }
 0x8b7   :  { %1587 = vmatprep.subr.mxu1 %v1552_v59  ;;  %v57_v59 = vld [vmem:[#allocation7 + $0x8] sm:$0xff] }
 0x8b9   :  { %v1474_v34 = vpop.permute.xlu1 %1473 }
 0x8ba   :  { %v1495_v36 = vsel %vm155_vm2, %v2631_v52, %v1474_v34  ;;  %v1741_v34 = vld [vmem:[#allocation5 + $0xf0] sm:$0xff] }
 0x8bd   :  { %v1482_v35 = vpop.permute.xlu1 %1481 }
 0x8be   :  { %v1498_v37 = vsel %vm1497_vm3, %v1495_v36, %v1482_v35  ;;  %v1740_v35 = vld [vmem:[#allocation5 + $0xe8] sm:$0xff]  ;;  %v1739_v36 = vld [vmem:[#allocation5 + $0xe0] sm:$0xff] }
 0x8bf   :  { %v2401_v21 = vpop.eup %2400 }
 0x8c0   :  { %v1309_v17 = vsel %vm155_vm2, %v2401_v21, 0.0 }
 0x8c1   :  { %1310 = vadd.xlane.f32.xlu0 %v1309_v17  ;;  %v1476_v38 = vpop.permute.xlu1 %1475 }
 0x8c2   :  { %v1496_v42 = vsel %vm155_vm2, %v2633_v54, %v1476_v38  ;;  %v1555_v38 = vsub.s32 1, %v2573_v12 }
 0x8c3   :  { %v2403_v22 = vpop.eup %2402 }
 0x8c4   :  { %v1312_v23 = vsel %vm155_vm2, %v2403_v22, 0.0 }
 0x8c5   :  { %1313 = vadd.xlane.f32.xlu0 %v1312_v23 }
 0x8db   :  { %1395 = vrot.lane.b32.xlu0 %v2587_v20, %s2525_s11 }
 0x94a   :  { %v1311_v24 = vpop.xlane.xlu0 %1310 }
 0x94b   :  { %2404 = vrcp.f32 %v1311_v24 }
 0x94e   :  { %v1314_v25 = vpop.xlane.xlu0 %1313 }
 0x94f   :  { %2406 = vrcp.f32 %v1314_v25 }
 0x952   :  { %v1396_v26 = vpop.permute.xlu0 %1395 }
 0x953   :  { %2330 = vmatpush3.msra.mxu0 %v1396_v26 }
 0x954   :  { %1683 = vmatprep.subr.mxu0 %v1648_v3 }
 0x958   :  { %v2405_v27 = vpop.eup %2404 }
 0x959   :  { %v1317_v28 = vmul.f32 %v2405_v27, %v2401_v21 }
 0x95b   :  { %2327 = vmatmul.mubr.msk.f32.vlgmr.msra.gmra.mxu1 %vm155_vm2, %v1317_v28 }
 0x95c   :  { %v2407_v29 = vpop.eup %2406  ;;  %1627 = vmatprep.mubr.f32.mxu1 %v2513_v0 }
 0x95d   :  { %v1318_v30 = vmul.f32 %v2407_v29, %v2403_v22  ;;  %v1541_v22 = vrot.slane %v2580_v14, %v1540_v18  ;;  %v1645_v29 = vld [vmem:[#allocation5 + $0xa0] sm:$0xff] }
 0x95f   :  { %2332 = vmatmul.mubr.msk.f32.vlgmr.msra.gmra.mxu0 %vm155_vm2, %v1318_v30  ;;  %v1644_v30 = vld [vmem:[#allocation5 + $0x98] sm:$0xff] }
 0x960   :  { %1723 = vmatprep.mubr.f32.mxu0 %v2513_v0  ;;  %1684 = vmatpush1.msra.mxu0 %v1647_v4 }
 0x961   :  { %1685 = vmatprep.subr.mxu0 %v1646_v5 }
 0x962   :  { %1686 = vmatpush1.msra.mxu0 %v1645_v29 }
 0x963   :  { %1687 = vmatprep.subr.mxu0 %v1644_v30 }
 0xa1b   :  { %v1391_v31 = vpop.f32.mrf.mxu1 }
 0xa1c   :  { %1489 = vrot.lane.b32.xlu0 %v1391_v31, %s2526_s12  ;;  %v1643_v31 = vld [vmem:[#allocation5 + $0x90] sm:$0xff] }
 0xa1d   :  { %v2328_v20 = vpop.f32.mrf.mxu1  ;;  %1688 = vmatpush1.msra.mxu0 %v1643_v31 }
 0xa1e   :  { %v1642_v20 = vld [vmem:[#allocation5 + $0x88] sm:$0xff] }
 0xa1f   :  { %v1467_v32 = vpop.f32.mrf.mxu0  ;;  %1689 = vmatprep.subr.mxu0 %v1642_v20 }
 0xa20   :  { %1483 = vrot.lane.b32.xlu0 %v1137_v63, %s2508_s16  ;;  %1491 = vrot.lane.b32.xlu1 %v1467_v32, %s2526_s12  ;;  %v1547_v63 = vld [vmem:[#allocation5 + $0x50] sm:$0xff]  ;;  %v1641_v32 = vld [vmem:[#allocation5 + $0x80] sm:$0xff] }
 0xa21   :  { %v2333_v33 = vpop.f32.mrf.mxu0  ;;  %1690 = vmatpush1.msra.mxu0 %v1641_v32 }
 0xa22   :  { %2334 = vmatprep.subr.mxu0 %v2513_v0  ;;  %v1742_v33 = vld [vmem:[#allocation5 + $0xf8] sm:$0xff] }
 0xa8e   :  { %v1490_v39 = vpop.permute.xlu0 %1489 }
 0xa8f   :  { %v1501_v40 = vsel %vm1500_vm4, %v1498_v37, %v1490_v39  ;;  %v1738_v37 = vld [vmem:[#allocation5 + $0xd8] sm:$0xff]  ;;  %v1556_v39 = vrot.slane %v2580_v14, %v1555_v38 }
 0xa90   :  { %v1503_v41 = vadd.f32 %v1501_v40, %v2563_v9 }
 0xa92   :  { %v1484_v43 = vpop.permute.xlu0 %1483  ;;  %v1492_v44 = vpop.permute.xlu1 %1491  ;;  %v1505_v45 = vsel %vm70_vm0, %v1503_v41, 0.0 }
 0xa93   :  { %v1499_v46 = vsel %vm1497_vm3, %v1496_v42, %v1484_v43  ;;  %1506 = vadd.xlane.f32.xlu0 %v1505_v45 }
 0xa94   :  { %v1502_v47 = vsel %vm1500_vm4, %v1499_v46, %v1492_v44 }
 0xa95   :  { %v1504_v48 = vadd.f32 %v1502_v47, %v2569_v10  ;;  %v1551_v10 = vld [vmem:[#allocation5 + $0x70] sm:$0xff] }
 0xa96   :  { %1588 = vmatpush1.msra.mxu1 %v1551_v10 }
 0xa97   :  { %v1508_v52 = vsel %vm70_vm0, %v1504_v48, 0.0  ;;  %1589 = vmatprep.subr.mxu1 %v1550_v60 }
 0xa98   :  { %1509 = vadd.xlane.f32.xlu1 %v1508_v52  ;;  %1590 = vmatpush1.msra.mxu1 %v1549_v61  ;;  %v1736_v52 = vld [vmem:[#allocation5 + $0xc8] sm:$0xff] }
 0xa99   :  { %1591 = vmatprep.subr.mxu1 %v1548_v62 }
 0xa9a   :  { %1592 = vmatpush1.msra.mxu1 %v1547_v63 }
 0xa9b   :  { %1593 = vmatprep.subr.mxu1 %v1546_v1 }
 0xa9c   :  { %1594 = vmatpush1.msra.mxu1 %v1545_v2 }
 0xa9d   :  { %1781 = vmatprep.subr.mxu1 %v1742_v33 }
 0xb1c   :  { %v1507_v49 = vpop.xlane.xlu0 %1506 }
 0xb1d   :  { %v1512_v50 = vmul.f32 0.03125, %v1507_v49  ;;  %v1735_v49 = vld [vmem:[#allocation5 + $0xc0] sm:$0xff] }
 0xb1f   :  { %v1514_v51 = vsub.f32 %v1503_v41, %v1512_v50  ;;  %v1651_v50 = vsub.s32 2, %v2573_v12 }
 0xb21   :  { %v1510_v53 = vpop.xlane.xlu1 %1509  ;;  %v1516_v9 = vmul.f32 %v1514_v51, %v1514_v51 }
 0xb22   :  { %v1513_v55 = vmul.f32 0.03125, %v1510_v53 }
 0xb23   :  { %v1518_v54 = vsel %vm70_vm0, %v1516_v9, 0.0 }
 0xb24   :  { %v1515_v56 = vsub.f32 %v1504_v48, %v1513_v55  ;;  %1519 = vadd.xlane.f32.xlu0 %v1518_v54  ;;  %v1737_v48 = vld [vmem:[#allocation5 + $0xd0] sm:$0xff] }
 0xb26   :  { %v1517_v57 = vmul.f32 %v1515_v56, %v1515_v56 }
 0xb28   :  { %v1521_v58 = vsel %vm70_vm0, %v1517_v57, 0.0 }
 0xb29   :  { %1522 = vadd.xlane.f32.xlu0 %v1521_v58  ;;  %v1745_v58 = vsub.s32 3, %v2573_v12 }
 0xb2b   :  { %v1746_v10 = vrot.slane %v2580_v14, %v1745_v58  ;;  %v1750_v60 = vrot.slane %v57_v59, %v1745_v58 }
 0xbad   :  { %v1520_v6 = vpop.xlane.xlu0 %1519 }
 0xbae   :  { %v1524_v7 = vmul.f32 0.03125, %v1520_v6 }
 0xbb0   :  { %v1526_v8 = vadd.f32 1e-05, %v1524_v7 }
 0xbb2   :  { %2408 = vrsqrt.f32 %v1526_v8  ;;  %v1523_v11 = vpop.xlane.xlu0 %1522 }
 0xbb3   :  { %v1525_v13 = vmul.f32 0.03125, %v1523_v11 }
 0xbb5   :  { %v1527_v15 = vadd.f32 1e-05, %v1525_v13 }
 0xbb7   :  { %2410 = vrsqrt.f32 %v1527_v15 }
 0xbbf   :  { %v2409_v21 = vpop.eup %2408 }
 0xbc0   :  { %v1530_v17 = vmul.f32 %v2409_v21, %v1514_v51  ;;  %v1652_v51 = vrot.slane %v2580_v14, %v1651_v50 }
 0xbc2   :  { %v1536_v23 = vmul.f32 %v1535_v19, %v1530_v17 }
 0xbc4   :  { %v2411_v24 = vpop.eup %2410  ;;  %v1542_v25 = vadd.f32 %v1541_v22, %v1536_v23 }
 0xbc5   :  { %v1531_v26 = vmul.f32 %v2411_v24, %v1515_v56 }
 0xbc6   :  { %2202 = vmatmul.mubr.msk.f32.vlgmr.msra.gmra.mxu1 %vm70_vm0, %v1542_v25 }
 0xbc7   :  { %1632 = vmatprep.mubr.f32.mxu1 %v2513_v0  ;;  %v1537_v27 = vmul.f32 %v1535_v19, %v1531_v26  ;;  %1782 = vmatpush1.msra.mxu1 %v1741_v34 }
 0xbc8   :  { %1783 = vmatprep.subr.mxu1 %v1740_v35 }
 0xbc9   :  { %v1543_v28 = vadd.f32 %v1541_v22, %v1537_v27  ;;  %1784 = vmatpush1.msra.mxu1 %v1739_v36 }
 0xbca   :  { %1785 = vmatprep.subr.mxu1 %v1738_v37 }
 0xbcb   :  { %2203 = vmatmul.mubr.msk.f32.gmra.mxu1 %vm70_vm0, %v1543_v28 }
 0xbcc   :  { %1821 = vmatprep.mubr.f32.mxu1 %v2513_v0  ;;  %1786 = vmatpush1.msra.mxu1 %v1737_v48 }
 0xbcd   :  { %1787 = vmatprep.subr.mxu1 %v1736_v52 }
 0xbce   :  { %1788 = vmatpush1.msra.mxu1 %v1735_v49 }
 0xbcf   :  { %2344 = vmatprep.subr.mxu1 %v2513_v0 }
 0xc86   :  { %v1629_v40 = vpop.f32.mrf.mxu1 }
 0xc87   :  { %v1630_v41 = vadd.f32 %v1629_v40, %v1556_v39 }
 0xc88   :  { %v1631_v42 = vpop.f32.mrf.mxu1 }
 0xc89   :  { %v1638_v43 = vmax.f32 %v1630_v41, 0.0 }
 0xc8b   :  { %v1634_v44 = vpop.f32.mrf.mxu1  ;;  %2204 = vmatmul.mubr.msk.f32.vlgmr.msra.gmra.mxu0 %vm70_vm0, %v1638_v43 }
 0xc8c   :  { %v1635_v45 = vadd.f32 %v1634_v44, %v1556_v39  ;;  %1728 = vmatprep.mubr.f32.mxu0 %v2513_v0 }
 0xc8d   :  { %v1636_v46 = vpop.f32.mrf.mxu1 }
 0xc8e   :  { %v1639_v47 = vmax.f32 %v1635_v45, 0.0 }
 0xc90   :  { %2205 = vmatmul.mubr.msk.f32.gmra.mxu0 %vm70_vm0, %v1639_v47 }
 0xc91   :  { %2336 = vmatprep.mubr.msk.f32.mxu0 %vm2514_vm1, %v2513_v0 }
 0xd4b   :  { %v1725_v53 = vpop.f32.mrf.mxu0 }
 0xd4c   :  { %v1726_v9 = vadd.f32 %v1725_v53, %v1652_v51 }
 0xd4d   :  { %v1727_v55 = vpop.f32.mrf.mxu0 }
 0xd4e   :  { %2206 = vmatmul.mubr.msk.f32.vlgmr.msra.gmra.mxu1 %vm70_vm0, %v1726_v9 }
 0xd4f   :  { %1827 = vmatprep.mubr.f32.mxu1 %v2513_v0 }
 0xd50   :  { %v1730_v54 = vpop.f32.mrf.mxu0 }
 0xd51   :  { %v1731_v56 = vadd.f32 %v1730_v54, %v1652_v51 }
 0xd52   :  { %v1732_v57 = vpop.f32.mrf.mxu0 }
 0xd53   :  { %2207 = vmatmul.mubr.msk.f32.gmra.mxu1 %vm70_vm0, %v1731_v56 }
 0xd54   :  { %2346 = vmatprep.mubr.msk.f32.mxu1 %vm2514_vm1, %v2513_v0 }
 0xe0e   :  { %v1823_v61 = vpop.f32.mrf.mxu1 }
 0xe0f   :  { %v1824_v62 = vadd.f32 %v1823_v61, %v1746_v10 }
 0xe10   :  { %v1825_v63 = vpop.f32.mrf.mxu1 }
 0xe11   :  { %v1826_v1 = vadd.f32 %v1825_v63, %v1750_v60  ;;  %2345 = vmatpush3.msra.mxu1 %v1824_v62 }
 0xe13   :  { %v1829_v2 = vpop.f32.mrf.mxu1  ;;  %1835 = vrot.lane.b32.xlu1 %v1826_v1, %s2515_s0 }
 0xe14   :  { %v1830_v3 = vadd.f32 %v1829_v2, %v1746_v10 }
 0xe15   :  { %v1831_v4 = vpop.f32.mrf.mxu1 }
 0xe16   :  { %v1832_v5 = vadd.f32 %v1831_v4, %v1750_v60 }
 0xe18   :  { %1912 = vrot.lane.b32.xlu0 %v1832_v5, %s2515_s0 }
 0xe85   :  { %v1836_v6 = vpop.permute.xlu1 %1835 }
 0xe86   :  { %2335 = vmatpush3.xpose.msk.msra.mxu0 %vm70_vm0, %v1836_v6 }
 0xe87   :  { %2339 = vmatprep.subr.mxu0 %v2513_v0 }
 0xe89   :  { %2337 = vmatmul.mubr.msk.f32.vlgmr.msra.gmra.mxu0 %vm70_vm0, %v1826_v1 }
 0xe8a   :  { %v1913_v12 = vpop.permute.xlu0 %1912  ;;  %2341 = vmatprep.mubr.msk.f32.mxu0 %vm2514_vm1, %v2513_v0 }
 0xe8b   :  { %2340 = vmatpush3.xpose.msk.msra.mxu0 %vm70_vm0, %v1913_v12 }
 0xe8c   :  { %2349 = vmatprep.subr.mxu0 %v2513_v0 }
 0xe8e   :  { %2342 = vmatmul.mubr.msk.f32.vlgmr.msra.gmra.mxu0 %vm70_vm0, %v1832_v5 }
 0xe8f   :  { %2350 = vmatpush3.msra.mxu0 %v1830_v3  ;;  %2351 = vmatprep.mubr.msk.f32.mxu0 %vm2514_vm1, %v2513_v0 }
 0xf49   :  { %v1907_v14 = vpop.f32.mrf.mxu0 }
 0xf4a   :  { %v1988_v7 = vsel %vm155_vm2, %v1907_v14, -inf }
 0xf4b   :  { %1989 = vmax.xlane.f32.xlu1 %v1988_v7  ;;  %v2338_v8 = vpop.f32.mrf.mxu0 }
 0xf4e   :  { %v1984_v11 = vpop.f32.mrf.mxu0 }
 0xf4f   :  { %v1991_v13 = vsel %vm155_vm2, %v1984_v11, -inf }
 0xf50   :  { %1992 = vmax.xlane.f32.xlu0 %v1991_v13  ;;  %v2343_v15 = vpop.f32.mrf.mxu0 }
 0xfd4   :  { %v1990_v16 = vpop.xlane.xlu1 %1989 }
 0xfd5   :  { %v1994_v18 = vsub.f32 %v1907_v14, %v1990_v16 }
 0xfd7   :  { %v1996_v19 = vmul.f32 1.442695, %v1994_v18 }
 0xfd9   :  { %2412 = vpow2.f32 %v1996_v19  ;;  %v1993_v21 = vpop.xlane.xlu0 %1992 }
 0xfda   :  { %v1995_v17 = vsub.f32 %v1984_v11, %v1993_v21 }
 0xfdc   :  { %v1998_v22 = vmul.f32 1.442695, %v1995_v17 }
 0xfde   :  { %2414 = vpow2.f32 %v1998_v22 }
 0xfe6   :  { %v2413_v23 = vpop.eup %2412 }
 0xfe7   :  { %v2000_v0 = vsel %vm155_vm2, %v2413_v23, 0.0 }
 0xfe8   :  { %2001 = vadd.xlane.f32.xlu1 %v2000_v0 }
 0xfeb   :  { %v2415_v24 = vpop.eup %2414 }
 0xfec   :  { %v2003_v25 = vsel %vm155_vm2, %v2415_v24, 0.0 }
 0xfed   :  { %2004 = vadd.xlane.f32.xlu0 %v2003_v25 }
0x1071   :  { %v2002_v26 = vpop.xlane.xlu1 %2001 }
0x1072   :  { %2416 = vrcp.f32 %v2002_v26 }
0x1076   :  { %v2005_v27 = vpop.xlane.xlu0 %2004 }
0x1077   :  { %2418 = vrcp.f32 %v2005_v27 }
0x107f   :  { %v2417_v28 = vpop.eup %2416 }
0x1080   :  { %v2008_v29 = vmul.f32 %v2417_v28, %v2413_v23 }
0x1082   :  { %2347 = vmatmul.mubr.msk.f32.vlgmr.msra.gmra.mxu1 %vm155_vm2, %v2008_v29 }
0x1084   :  { %v2419_v30 = vpop.eup %2418 }
0x1085   :  { %v2009_v31 = vmul.f32 %v2419_v30, %v2415_v24 }
0x1087   :  { %2352 = vmatmul.mubr.msk.f32.vlgmr.msra.gmra.mxu0 %vm155_vm2, %v2009_v31 }
0x1142   :  { %v2079_v20 = vpop.f32.mrf.mxu1 }
0x1143   :  { %2156 = vst [vmem:[#allocation8] sm:$0xff] %v2079_v20 }
0x1144   :  { %v2348_v32 = vpop.f32.mrf.mxu1 }
0x1147   :  { %v2152_v33 = vpop.f32.mrf.mxu0 }
0x1148   :  { %2157 = vst [vmem:[#allocation8 + $0x8] sm:$0xff] %v2152_v33 }
0x1149   :  { %v2353_v34 = vpop.f32.mrf.mxu0 }
0x114a   :  { %2491 = shalt.err (!%p2488_p5)
}
0x114b   :  { %2169 = dma.vmem_to_hbm [thread:$0]  %s2164_s14, 256, %s2774_s3, [#allocation4], %s2510_s22, %s2510_s22, %s2511_s23  }
0x114c   :  { %2504 = dma.done.wait [#allocation4], 256  }
0x114d   :  { %2505 = vsyncadd [#allocation4], 4294967040 }
0x114e   :  { %2173 = vsyncpa [#allocation3], 1 }
0x114f   :  { %2174 = vsyncpa [#allocation6], 1 }
0x1150   :  { %2175 = vsyncpa [#allocation4], 1 }

</bundles_post_ra>
